<compile_context>
chip_gen: v7x
topology: tpu7x:2x2x1
jax: 0.10.0
libtpu: 0.0.40
codegen_flags: <defaults>
</compile_context>

<pallas_src>
import jax
import jax.numpy as jnp
from jax.experimental import pallas as pl
from jax.experimental.pallas import tpu as pltpu

INPUT_DIM = 192
HIDDEN_DIM = 128
NUM_CLASSES = 34


def _round_up(n, m):
    return ((n + m - 1) // m) * m


def _tile_cap():
    """Batch-tile cap per TPU generation (4096 on v7x, 2048 otherwise)."""
    try:
        kind = jax.devices()[0].device_kind.lower()
        if "v7" in kind:
            return 4096
    except Exception:
        pass
    return 2048


def _choose_batch_tile(B, cap):
    """Big tiles to amortize the ~0.35us/step overhead; single grid step for
    small batches; >=2 steps for large batches so v7x megacore shards them."""
    Bp = _round_up(B, 8)
    if Bp <= 1024:
        return min(Bp, cap)
    tb = min(cap, Bp)
    if (Bp + tb - 1) // tb < 2:
        tb = _round_up((Bp + 1) // 2, 8)
    return tb


def _mlp_kernel(x_ref, w1_ref, b1_ref, w2_ref, b2_ref, o_ref):
    # In-kernel cast f32 -> bf16 (cheap VPU pack; avoids an extra HBM pass).
    x = x_ref[...].astype(jnp.bfloat16)
    # Linear(192 -> 128): bf16 operands, f32 accumulation on the MXU.
    h = jnp.dot(x, w1_ref[...], preferred_element_type=jnp.float32)
    h = jnp.maximum(h + b1_ref[...], 0.0)
    # TODO(synk): training-mode Dropout(0.3) (pltpu.prng_random_bits mask +
    # 1/(1-p) scaling) not implemented; eval-mode forward (identity) only.
    # Linear(128 -> 34): hidden re-cast to bf16, f32 accumulation.
    out = jnp.dot(h.astype(jnp.bfloat16), w2_ref[...],
                  preferred_element_type=jnp.float32)
    o_ref[...] = (out + b2_ref[...]).astype(o_ref.dtype)


def prepare_params(w1, b1, w2, b2):
    """One-time parameter prep (hoisted out of the forward): bf16 weights,
    f32 row-vector biases."""
    return (w1.astype(jnp.bfloat16),
            b1.reshape(1, HIDDEN_DIM).astype(jnp.float32),
            w2.astype(jnp.bfloat16),
            b2.reshape(1, NUM_CLASSES).astype(jnp.float32))


def ecapa_classifier_forward(x, params):
    """x: (B, 192) f32. params = prepare_params(...). Returns (B, 34) f32 logits.

    Note: weights are held in bf16 (f32 MXU accumulation), so logits differ
    slightly from a pure-f32 PyTorch forward (~1e-2 relative)."""
    w1b, b1, w2b, b2 = params
    B, D = x.shape
    assert D == INPUT_DIM

    tb = _choose_batch_tile(B, _tile_cap())
    grid = (pl.cdiv(B, tb),)

    return pl.pallas_call(
        _mlp_kernel,
        out_shape=jax.ShapeDtypeStruct((B, NUM_CLASSES), jnp.float32),
        grid_spec=pltpu.PrefetchScalarGridSpec(
            num_scalar_prefetch=0,
            grid=grid,
            in_specs=[
                pl.BlockSpec((tb, INPUT_DIM), lambda i: (i, 0)),              # x tile (streamed, f32)
                pl.BlockSpec((INPUT_DIM, HIDDEN_DIM), lambda i: (0, 0)),      # W1 (resident, bf16)
                pl.BlockSpec((1, HIDDEN_DIM), lambda i: (0, 0)),              # b1 (resident, f32)
                pl.BlockSpec((HIDDEN_DIM, NUM_CLASSES), lambda i: (0, 0)),    # W2 (resident, bf16)
                pl.BlockSpec((1, NUM_CLASSES), lambda i: (0, 0)),             # b2 (resident, f32)
            ],
            out_specs=pl.BlockSpec((tb, NUM_CLASSES), lambda i: (i, 0)),
        ),
        compiler_params=pltpu.CompilerParams(
            dimension_semantics=("parallel",),
        ),
    )(x, w1b, b1, w2b, b2)


def init_params(key):
    """Deterministic init matching PyTorch nn.Linear shapes.

    PyTorch stores weight as (out, in); we store the transpose (in, out) so the
    kernel computes x @ W directly. Init mimics PyTorch's U(-1/sqrt(fan_in), +)."""
    k1, k2, k3, k4 = jax.random.split(key, 4)
    bound1 = 1.0 / (INPUT_DIM ** 0.5)
    bound2 = 1.0 / (HIDDEN_DIM ** 0.5)
    w1 = jax.random.uniform(k1, (INPUT_DIM, HIDDEN_DIM), jnp.float32,
                            minval=-bound1, maxval=bound1)
    b1 = jax.random.uniform(k2, (1, HIDDEN_DIM), jnp.float32,
                            minval=-bound1, maxval=bound1)
    w2 = jax.random.uniform(k3, (HIDDEN_DIM, NUM_CLASSES), jnp.float32,
                            minval=-bound2, maxval=bound2)
    b2 = jax.random.uniform(k4, (1, NUM_CLASSES), jnp.float32,
                            minval=-bound2, maxval=bound2)
    return w1, b1, w2, b2


def reference_forward_bf16(x, w1, b1, w2, b2):
    """Reference matching the kernel's bf16-operand / f32-accumulation numerics."""
    xb = x.astype(jnp.bfloat16)
    w1b = w1.astype(jnp.bfloat16)
    w2b = w2.astype(jnp.bfloat16)
    h = jnp.dot(xb, w1b, preferred_element_type=jnp.float32) + b1
    h = jnp.maximum(h, 0.0).astype(jnp.bfloat16)
    return jnp.dot(h, w2b, preferred_element_type=jnp.float32) + b2


def reference_forward_f32(x, w1, b1, w2, b2):
    h = jnp.maximum(x @ w1 + b1, 0.0)
    return h @ w2 + b2


if __name__ == "__main__":
    key = jax.random.PRNGKey(0)
    kx, kp, kx2 = jax.random.split(key, 3)
    w1, b1, w2, b2 = init_params(kp)
    params = prepare_params(w1, b1, w2, b2)   # one-time weight prep

    # Small-batch demo (single grid step path).
    B = 8
    x = jax.random.normal(kx, (B, INPUT_DIM), jnp.float32)
    out = jax.block_until_ready(ecapa_classifier_forward(x, params))
    assert out.shape == (B, NUM_CLASSES)
    ref_bf16 = reference_forward_bf16(x, w1, b1, w2, b2)
    ref_f32 = reference_forward_f32(x, w1, b1, w2, b2)
    assert jnp.allclose(out, ref_bf16, atol=2e-3, rtol=2e-3), "mismatch vs bf16 reference"
    assert jnp.allclose(out, ref_f32, atol=5e-2, rtol=5e-2), "mismatch vs f32 reference"

    # Larger batch exercising the multi-step (tiled, >=2 grid steps) path.
    B2 = 1536
    x2 = jax.random.normal(kx2, (B2, INPUT_DIM), jnp.float32)
    out2 = jax.block_until_ready(ecapa_classifier_forward(x2, params))
    assert out2.shape == (B2, NUM_CLASSES)
    ref2 = reference_forward_bf16(x2, w1, b1, w2, b2)
    assert jnp.allclose(out2, ref2, atol=2e-3, rtol=2e-3), "mismatch vs bf16 reference (tiled)"

    print("KERNEL_OK")
</pallas_src>

<mosaic_0001>
module attributes {stable_mosaic.version = 11 : i64} {
  func.func @_mlp_kernel(%arg0: i32, %arg1: memref<8x192xf32, #tpu.memory_space<vmem>>, %arg2: memref<192x128xbf16, #tpu.memory_space<vmem>>, %arg3: memref<1x128xf32, #tpu.memory_space<vmem>>, %arg4: memref<128x34xbf16, #tpu.memory_space<vmem>>, %arg5: memref<1x34xf32, #tpu.memory_space<vmem>>, %arg6: memref<8x34xf32, #tpu.memory_space<vmem>>) attributes {dimension_semantics = [#tpu.dimension_semantics<parallel>], iteration_bounds = array<i64: 1>, scalar_prefetch = 0 : i64, scratch_operands = 0 : i64, tpu.core_type = #tpu.core_type<tc>, window_params = [{transform_indices = @transform_0, window_bounds = array<i64: 8, 192>}, {pipeline_mode = #tpu.pipeline_mode<synchronous>, transform_indices = @transform_1, window_bounds = array<i64: 192, 128>}, {pipeline_mode = #tpu.pipeline_mode<synchronous>, transform_indices = @transform_2, window_bounds = array<i64: 1, 128>}, {pipeline_mode = #tpu.pipeline_mode<synchronous>, transform_indices = @transform_3, window_bounds = array<i64: 128, 34>}, {pipeline_mode = #tpu.pipeline_mode<synchronous>, transform_indices = @transform_4, window_bounds = array<i64: 1, 34>}, {transform_indices = @transform_5, window_bounds = array<i64: 8, 34>}]} {
    %c0 = arith.constant 0 : index
    %c0_0 = arith.constant 0 : index
    %0 = vector.load %arg1[%c0, %c0_0] : memref<8x192xf32, #tpu.memory_space<vmem>>, vector<8x192xf32>
    %1 = arith.truncf %0 : vector<8x192xf32> to vector<8x192xbf16>
    %c0_1 = arith.constant 0 : index
    %c0_2 = arith.constant 0 : index
    %2 = vector.load %arg2[%c0_1, %c0_2] : memref<192x128xbf16, #tpu.memory_space<vmem>>, vector<192x128xbf16>
    %cst = arith.constant dense<0.000000e+00> : vector<8x128xf32>
    %3 = tpu.matmul %1, %2, %cst {dimension_numbers = #tpu.dot_dimension_numbers<[1], [0], [0], [1], [0, 0, 1, 1], [], []>} : vector<8x192xbf16>, vector<192x128xbf16>, vector<8x128xf32> -> vector<8x128xf32>
    %c0_3 = arith.constant 0 : index
    %c0_4 = arith.constant 0 : index
    %4 = vector.load %arg3[%c0_3, %c0_4] : memref<1x128xf32, #tpu.memory_space<vmem>>, vector<1x128xf32>
    %5 = vector.broadcast %4 : vector<1x128xf32> to vector<8x128xf32>
    %6 = arith.addf %3, %5 : vector<8x128xf32>
    %cst_5 = arith.constant 0.000000e+00 : f32
    %7 = vector.broadcast %cst_5 : f32 to vector<8x128xf32>
    %8 = arith.maximumf %6, %7 : vector<8x128xf32>
    %9 = arith.truncf %8 : vector<8x128xf32> to vector<8x128xbf16>
    %c0_6 = arith.constant 0 : index
    %c0_7 = arith.constant 0 : index
    %10 = vector.load %arg4[%c0_6, %c0_7] : memref<128x34xbf16, #tpu.memory_space<vmem>>, vector<128x34xbf16>
    %cst_8 = arith.constant dense<0.000000e+00> : vector<8x34xf32>
    %11 = tpu.matmul %9, %10, %cst_8 {dimension_numbers = #tpu.dot_dimension_numbers<[1], [0], [0], [1], [0, 0, 1, 1], [], []>} : vector<8x128xbf16>, vector<128x34xbf16>, vector<8x34xf32> -> vector<8x34xf32>
    %c0_9 = arith.constant 0 : index
    %c0_10 = arith.constant 0 : index
    %12 = vector.load %arg5[%c0_9, %c0_10] : memref<1x34xf32, #tpu.memory_space<vmem>>, vector<1x34xf32>
    %13 = vector.broadcast %12 : vector<1x34xf32> to vector<8x34xf32>
    %14 = arith.addf %11, %13 : vector<8x34xf32>
    %c0_11 = arith.constant 0 : index
    %c0_12 = arith.constant 0 : index
    %15 = vector.load %arg6[%c0_11, %c0_12] : memref<8x34xf32, #tpu.memory_space<vmem>>, vector<8x34xf32>
    tpu.vector_store %arg6[%c0_11, %c0_12], %14 {strides = array<i32>} : memref<8x34xf32, #tpu.memory_space<vmem>>, vector<8x34xf32>,
    return
  }
  func.func @transform_0(%arg0: i32) -> (i32, i32) {
    %c0_i32 = arith.constant 0 : i32
    %c0_i32_0 = arith.constant 0 : i32
    return %arg0, %c0_i32 : i32, i32
  }
  func.func @transform_1(%arg0: i32) -> (i32, i32) {
    %c0_i32 = arith.constant 0 : i32
    %c0_i32_0 = arith.constant 0 : i32
    %c0_i32_1 = arith.constant 0 : i32
    return %c0_i32, %c0_i32_0 : i32, i32
  }
  func.func @transform_2(%arg0: i32) -> (i32, i32) {
    %c0_i32 = arith.constant 0 : i32
    %c0_i32_0 = arith.constant 0 : i32
    %c0_i32_1 = arith.constant 0 : i32
    return %c0_i32, %c0_i32_0 : i32, i32
  }
  func.func @transform_3(%arg0: i32) -> (i32, i32) {
    %c0_i32 = arith.constant 0 : i32
    %c0_i32_0 = arith.constant 0 : i32
    %c0_i32_1 = arith.constant 0 : i32
    return %c0_i32, %c0_i32_0 : i32, i32
  }
  func.func @transform_4(%arg0: i32) -> (i32, i32) {
    %c0_i32 = arith.constant 0 : i32
    %c0_i32_0 = arith.constant 0 : i32
    %c0_i32_1 = arith.constant 0 : i32
    return %c0_i32, %c0_i32_0 : i32, i32
  }
  func.func @transform_5(%arg0: i32) -> (i32, i32) {
    %c0_i32 = arith.constant 0 : i32
    %c0_i32_0 = arith.constant 0 : i32
    return %arg0, %c0_i32 : i32, i32
  }
}

</mosaic_0001>

<bundles_post_ra>
// kernel: tpu_custom_call.1
= control target key start
LH: loop header
LB: loop body
LE: loop exit
PB: predicated region body
PF: predicated region fallthrough
CT: control target
= control target key end

     0   :  { %10 = vsyncpa [#allocation3], 0  ;;  %s550_s0 = inlined_call_operand.vmem [shape: f32[8,192], index: 0, kind: input, shape index: {}]   ;;  %s551_s1 = inlined_call_operand.hbm [shape: bf16[192,128], index: 1, kind: input, shape index: {}]   ;;  %s552_s2 = inlined_call_operand.vmem [shape: f32[1,128], index: 2, kind: input, shape index: {}]   ;;  %s553_s3 = inlined_call_operand.vmem [shape: bf16[128,34], index: 3, kind: input, shape index: {}]   ;;  %s554_s4 = inlined_call_operand.vmem [shape: f32[1,34], index: 4, kind: input, shape index: {}]   ;;  %s555_s5 = inlined_call_operand.hbm [shape: f32[8,34], index: 5, kind: output, shape index: {}]  }
   0x1   :  { %11 = vsyncpa [#allocation4], 0  ;;  %s444_s18 = smov [#allocation2]   ;;  %s396_s22 = scalar_lea.hbm %s551_s1, 1536 }
   0x2   :  { %s19_s19 = sshll.u32 %s444_s18, 4  ;;  %p397_p0 = scmp.ne.s32.totalorder %s551_s1, %s396_s22  ;;  %s20_s19 = int_to_ptr.vmem [resolvable:$true] %s19_s19 }
   0x3   :  { %p400_p1 = scmp.lt.u32.totalorder %s396_s22, %s551_s1 }
   0x5   :  { %p402_p2 = pnand %p400_p1, %p397_p0 }
   0x7   :  { %405 = shalt.err (!%p402_p2)
}
   0x8   :  { %s406_s27 = scalar_lea.vmem %s20_s19, 1536  ;;  %p411_p4 = scmp.lt.s32.totalorder %s20_s19, %s20_s19 }
   0x9   :  { %p407_p3 = scmp.ne.s32.totalorder %s20_s19, %s406_s27  ;;  %p412_p5 = scmp.lt.s32.totalorder %s406_s27, %s406_s27 }
   0xb   :  { %p413_p6 = por %p412_p5, %p411_p4 }
   0xd   :  { %p414_p7 = pnand %p413_p6, %p407_p3 }
   0xf   :  { %417 = shalt.err (!%p414_p7)
}
  0x10   :  { %s445_s28 = smov 64   ;;  %s446_s29 = smov 4  }
  0x11   :  { %25 = dma.hbm_to_vmem [thread:$0]  %s551_s1, 1536, %s20_s19, [#allocation3], %s445_s28, %s445_s28, %s446_s29  }
  0x12   :  { %440 = dma.done.wait [#allocation3], 1536  }
  0x13   :  { %441 = vsyncadd [#allocation3], 4294965760  ;;  %v447_v0 = vmov 0   ;;  %v448_v1 = vmov 0.0   ;;  %v376_v2 = vld [vmem:[#allocation2] sm:$0xff]   ;;  %v377_v3 = vld [vmem:[#allocation2 + $0x8] sm:$0xff]  }
  0x14   :  { %147 = vmatprep.subr.bf16.mxu0 %v447_v0  ;;  %349 = vmatprep.subr.bf16.mxu1 %v448_v1  ;;  %v378_v4 = vld [vmem:[#allocation2 + $0x10] sm:$0xff]   ;;  %v379_v5 = vld [vmem:[#allocation2 + $0x18] sm:$0xff]   ;;  %v37_v6 = vld [vmem:[%s550_s0 + $0x8] sm:$0xff]  ;;  %vm143_vm0 = vcmask 523264   ;;  %vm449_vm1 = vmmov 0   ;;  %vm300_vm2 = vcmask 277504  }
  0x15   :  { %148 = vmatpush1.bf16.msra.mxu0 %v376_v2  ;;  %v39_v7 = vpack.c.bf16 %v37_v6, %v37_v6  ;;  %v388_v8 = vld [vmem:[%s553_s3] sm:$0xff]   ;;  %v389_v10 = vld [vmem:[%s553_s3 + $0x8] sm:$0xff]   ;;  %v390_v12 = vld [vmem:[%s553_s3 + $0x10] sm:$0xff]   ;;  %365 = vmatprep.mubr.msk.bf16.mxu1 %vm449_vm1, %v448_v1 }
  0x16   :  { %149 = vmatprep.subr.bf16.mxu0 %v447_v0  ;;  %v380_v9 = vld [vmem:[#allocation2 + $0x20] sm:$0xff]   ;;  %350 = vmatpush3.bf16.msra.mxu1 %v388_v8  ;;  %v381_v11 = vld [vmem:[#allocation2 + $0x28] sm:$0xff]   ;;  %v382_v13 = vld [vmem:[#allocation2 + $0x30] sm:$0xff]  }
  0x17   :  { %330 = vmatprep.mubr.msk.bf16.mxu0 %vm143_vm0, %v39_v7  ;;  %351 = vmatprep.subr.bf16.mxu1 %v448_v1  ;;  %v391_v14 = vld [vmem:[%s553_s3 + $0x18] sm:$0xff]   ;;  %v392_v16 = vld [vmem:[%s553_s3 + $0x20] sm:$0xff]   ;;  %v393_v18 = vld [vmem:[%s553_s3 + $0x28] sm:$0xff]  }
  0x18   :  { %v383_v15 = vld [vmem:[#allocation2 + $0x38] sm:$0xff]   ;;  %v384_v17 = vld [vmem:[#allocation2 + $0x40] sm:$0xff]   ;;  %v385_v19 = vld [vmem:[#allocation2 + $0x48] sm:$0xff]  }
  0x19   :  { %150 = vmatpush1.bf16.msra.mxu0 %v377_v3  ;;  %v386_v20 = vld [vmem:[#allocation2 + $0x50] sm:$0xff]   ;;  %v387_v21 = vld [vmem:[#allocation2 + $0x58] sm:$0xff]   ;;  %v36_v22 = vld [vmem:[%s550_s0] sm:$0xff] }
  0x1a   :  { %151 = vmatprep.subr.bf16.mxu0 %v447_v0  ;;  %352 = vmatpush3.bf16.msra.mxu1 %v389_v10  ;;  %v38_v23 = vpack.c.bf16 %v36_v22, %v36_v22  ;;  %v394_v24 = vld [vmem:[%s553_s3 + $0x30] sm:$0xff]   ;;  %v395_v25 = vld [vmem:[%s553_s3 + $0x38] sm:$0xff]   ;;  %v317_v26 = vld [vmem:[%s552_s2] ss:$0 sm:$0xff]  ;;  %s450_s3 = smov [#allocation5]  }
  0x1b   :  { %353 = vmatprep.subr.bf16.mxu1 %v448_v1  ;;  %v331_v34 = vld [vmem:[%s554_s4] ss:$0 sm:$0xff]  ;;  %s308_s29 = sshll.u32 %s450_s3, 4  ;;  %s309_s29 = int_to_ptr.vmem [resolvable:$true] %s308_s29 }
  0x1c   :  { %s418_s2 = scalar_lea.vmem %s309_s29, 128  ;;  %p423_p9 = scmp.lt.s32.totalorder %s309_s29, %s309_s29 }
  0x1d   :  { %152 = vmatpush1.bf16.msra.mxu0 %v378_v4  ;;  %p419_p8 = scmp.ne.s32.totalorder %s309_s29, %s418_s2  ;;  %p424_p10 = scmp.lt.s32.totalorder %s418_s2, %s418_s2 }
  0x1e   :  { %153 = vmatprep.subr.bf16.mxu0 %v447_v0  ;;  %354 = vmatpush3.bf16.msra.mxu1 %v390_v12 }
  0x1f   :  { %355 = vmatprep.subr.bf16.mxu1 %v448_v1  ;;  %p425_p11 = por %p424_p10, %p423_p9 }
  0x21   :  { %154 = vmatpush1.bf16.msra.mxu0 %v379_v5  ;;  %p426_p12 = pnand %p425_p11, %p419_p8 }
  0x22   :  { %155 = vmatprep.subr.bf16.mxu0 %v447_v0  ;;  %356 = vmatpush3.bf16.msra.mxu1 %v391_v14 }
  0x23   :  { %357 = vmatprep.subr.bf16.mxu1 %v448_v1 }
  0x25   :  { %156 = vmatpush1.bf16.msra.mxu0 %v380_v9 }
  0x26   :  { %157 = vmatprep.subr.bf16.mxu0 %v447_v0  ;;  %358 = vmatpush3.bf16.msra.mxu1 %v392_v16 }
  0x27   :  { %359 = vmatprep.subr.bf16.mxu1 %v448_v1 }
  0x29   :  { %158 = vmatpush1.bf16.msra.mxu0 %v381_v11 }
  0x2a   :  { %159 = vmatprep.subr.bf16.mxu0 %v447_v0  ;;  %360 = vmatpush3.bf16.msra.mxu1 %v393_v18 }
  0x2b   :  { %361 = vmatprep.subr.bf16.mxu1 %v448_v1 }
  0x2d   :  { %160 = vmatpush1.bf16.msra.mxu0 %v382_v13 }
  0x2e   :  { %161 = vmatprep.subr.bf16.mxu0 %v447_v0  ;;  %362 = vmatpush3.bf16.msra.mxu1 %v394_v24 }
  0x2f   :  { %363 = vmatprep.subr.bf16.mxu1 %v448_v1 }
  0x31   :  { %162 = vmatpush1.bf16.msra.mxu0 %v383_v15 }
  0x32   :  { %163 = vmatprep.subr.bf16.mxu0 %v447_v0  ;;  %364 = vmatpush3.bf16.msra.mxu1 %v395_v25 }
  0x35   :  { %164 = vmatpush1.bf16.msra.mxu0 %v384_v17 }
  0x36   :  { %165 = vmatprep.subr.bf16.mxu0 %v447_v0 }
  0x39   :  { %166 = vmatpush1.bf16.msra.mxu0 %v385_v19 }
  0x3a   :  { %167 = vmatprep.subr.bf16.mxu0 %v447_v0 }
  0x3d   :  { %168 = vmatpush1.bf16.msra.mxu0 %v386_v20 }
  0x3e   :  { %169 = vmatprep.subr.bf16.mxu0 %v447_v0 }
  0x41   :  { %170 = vmatpush1.bf16.msra.mxu0 %v387_v21 }
  0x44   :  { %180 = vmatmul.mubr.bf16.vlgmr.msra.gmra.mrb[0].mxu0 %v38_v23 }
 0x117   :  { %v181_v27 = vpop.f32.mrb[0].mxu0 }
 0x118   :  { %v182_v28 = vadd.f32 %v317_v26, %v181_v27  ;;  %v183_v29 = vpop.f32.mrb[1].mxu0 }
 0x119   :  { %v184_v30 = vpop.f32.mrb[2].mxu0 }
 0x11a   :  { %v187_v31 = vmax.f32 %v182_v28, 0.0  ;;  %v185_v32 = vpop.f32.mrb[3].mxu0 }
 0x11c   :  { %v188_v33 = vpack.c.bf16 %v187_v31, %v187_v31 }
 0x11e   :  { %366 = vmatmul.mubr.bf16.vlgmr.msra.gmra.mrb[0].mxu1 %v188_v33 }
 0x1f1   :  { %v294_v35 = vpop.f32.mrb[0].mxu1 }
 0x1f2   :  { %v295_v36 = vadd.f32 %v331_v34, %v294_v35  ;;  %v367_v37 = vpop.f32.mrb[1].mxu1 }
 0x1f3   :  { %v297_v38 = vpop.f32.mrb[2].mxu1 }
 0x1f4   :  { %v368_v39 = vpop.f32.mrb[3].mxu1  ;;  %301 = vst.msk [vmem:[#allocation5] sm:$0xff] %vm300_vm2, %v295_v36 }
 0x1f5   :  { %429 = shalt.err (!%p426_p12)
}
 0x1f6   :  { %s430_s4 = scalar_lea.hbm %s555_s5, 128 }
 0x1f7   :  { %p431_p13 = scmp.ne.s32.totalorder %s555_s5, %s430_s4  ;;  %p434_p0 = scmp.lt.u32.totalorder %s430_s4, %s555_s5 }
 0x1f9   :  { %p436_p1 = pnand %p434_p0, %p431_p13 }
 0x1fb   :  { %439 = shalt.err (!%p436_p1)
}
 0x1fc   :  { %311 = dma.vmem_to_hbm [thread:$0]  %s309_s29, 128, %s555_s5, [#allocation4]  }
 0x1fd   :  { %442 = dma.done.wait [#allocation4], 128  }
 0x1fe   :  { %443 = vsyncadd [#allocation4], 4294967168 }
 0x1ff   :  { %315 = vsyncpa [#allocation3], 1 }
 0x200   :  { %316 = vsyncpa [#allocation4], 1 }

</bundles_post_ra>
